<compile_context>
chip_gen: v7x
topology: tpu7x:2x2x1
jax: 0.10.0
libtpu: 0.0.40
codegen_flags: <defaults>
</compile_context>

<pallas_src>
import numpy as np
import jax
import jax.numpy as jnp
from jax import lax
from jax.experimental import pallas as pl
from jax.experimental.pallas import tpu as pltpu


def _round_up(x, m):
    return -(-x // m) * m


_VMEM_FALLBACK = 32 * 1024 * 1024
_vmem_cache = []


def _vmem_limit_bytes():
    """Generation-aware VMEM limit: ~48 MiB on v7x (64 MiB phys), 96 MiB on v5e/v6e (128 MiB)."""
    if _vmem_cache:
        return _vmem_cache[0]
    limit = _VMEM_FALLBACK
    try:
        cap = int(getattr(pltpu.get_tpu_info(), "vmem_capacity_bytes", 0))
        if cap > 0:
            limit = min(cap * 3 // 4, 96 * 1024 * 1024)
    except Exception:
        pass
    _vmem_cache.append(limit)
    return limit


# --------------------------------------------------------------------------------------
# Pallas kernel 1: Mel2Control stand-in (fused 2-layer MLP + control epilogue)
# TODO(synk): the original Mel2Control (Conv1d stack + decoder) body is not provided in the
#             reference source; a deterministic 2-layer MLP stands in.
# --------------------------------------------------------------------------------------
def make_mlp_kernel(sampling_rate, n_harmonics, negative_slope=0.01):
    nyquist = 0.5 * float(sampling_rate)
    nH = n_harmonics

    def kernel(x_ref, f0_ref, w1_ref, b1_ref, w2_ref, b2_ref, an_ref, gd_ref):
        # bf16 inputs/weights, f32 accumulation on the MXU
        h = jnp.dot(x_ref[...], w1_ref[...],
                    preferred_element_type=jnp.float32) + b1_ref[...]
        h = jnp.where(h > 0, h, negative_slope * h)        # LeakyReLU (PyTorch default 0.01)
        o = jnp.dot(h.astype(w2_ref.dtype), w2_ref[...],
                    preferred_element_type=jnp.float32) + b2_ref[...]

        # fused epilogue: exp(.)/128, remove_above_fmax mask, pi*tanh (per output column)
        col = lax.broadcasted_iota(jnp.int32, o.shape, 1)             # (TR, 128)
        f0 = f0_ref[...]                                              # (TR, 1) f32
        exp_o = jnp.exp(o)
        an = exp_o * (1.0 / 128.0)                                    # amplitudes / noise mags
        level = (col + 1).astype(jnp.float32)                         # level_start = 1
        aa = (f0 * level < nyquist).astype(jnp.float32) + 1e-7
        an = jnp.where(col < nH, an * aa, an)                         # mask only amplitude cols
        an_ref[...] = an.astype(an_ref.dtype)                         # bf16 writeback

        # group delay: tanh derived from the exp already on the EUP result path
        # tanh(o) = 1 - 2 / (exp(2o) + 1)
        e2 = exp_o * exp_o
        gd_ref[...] = np.pi * (1.0 - 2.0 * pl.reciprocal(e2 + 1.0, approx=True))

    return kernel


def mel2ctrl_fused(x, f0_frames, params, sampling_rate, nH, nA, nN, row_tile=1024):
    """x: (B, F, Cin) control-net input; f0_frames: (B, F, 1).
    Returns (amplitudes bf16, group_delay f32, noise_mag bf16) at frame rate."""
    B, Fr, Cin = x.shape
    R = B * Fr
    CP = 128                                   # pad all channel dims to the 128-lane width
    Hd = params["w1"].shape[1]
    n_out = nH + nA + nN
    assert Cin <= CP and Hd <= CP and n_out <= CP

    # big row tiles (overhead amortisation) but keep >=2 grid steps when possible;
    # 16-row granularity for bf16 sublane packing.
    TR = min(row_tile, max(16, _round_up(-(-R // 2), 16)))
    R_pad = _round_up(R, TR)

    x2 = jnp.pad(x.reshape(R, Cin).astype(jnp.float32),
                 ((0, R_pad - R), (0, CP - Cin))).astype(jnp.bfloat16)
    f02 = jnp.pad(f0_frames.reshape(R, 1).astype(jnp.float32), ((0, R_pad - R), (0, 0)))
    w1 = jnp.pad(params["w1"], ((0, CP - Cin), (0, CP - Hd))).astype(jnp.bfloat16)
    b1 = jnp.pad(params["b1"], ((0, 0), (0, CP - Hd))).astype(jnp.float32)
    w2 = jnp.pad(params["w2"], ((0, CP - Hd), (0, CP - n_out))).astype(jnp.bfloat16)
    b2 = jnp.pad(params["b2"], ((0, 0), (0, CP - n_out))).astype(jnp.float32)

    an, gd = pl.pallas_call(
        make_mlp_kernel(sampling_rate, nH),
        out_shape=(jax.ShapeDtypeStruct((R_pad, CP), jnp.bfloat16),
                   jax.ShapeDtypeStruct((R_pad, CP), jnp.float32)),
        grid=(R_pad // TR,),
        in_specs=[
            pl.BlockSpec((TR, CP), lambda r: (r, 0)),   # activations (row tile)
            pl.BlockSpec((TR, 1), lambda r: (r, 0)),    # f0 per row (for fmax mask)
            pl.BlockSpec((CP, CP), lambda r: (0, 0)),   # weights resident across grid
            pl.BlockSpec((1, CP), lambda r: (0, 0)),
            pl.BlockSpec((CP, CP), lambda r: (0, 0)),
            pl.BlockSpec((1, CP), lambda r: (0, 0)),
        ],
        out_specs=(pl.BlockSpec((TR, CP), lambda r: (r, 0)),
                   pl.BlockSpec((TR, CP), lambda r: (r, 0))),
        compiler_params=pltpu.CompilerParams(
            dimension_semantics=("parallel",),
            vmem_limit_bytes=_vmem_limit_bytes()),
    )(x2, f02, w1, b1, w2, b2)

    an = an[:R].reshape(B, Fr, CP)
    gd = gd[:R].reshape(B, Fr, CP)
    return an[..., :nH], gd[..., nH:nH + nA], an[..., nH + nA:nH + nA + nN]


# --------------------------------------------------------------------------------------
# Pallas kernel 2: sinusoid synthesis with in-kernel phase generation
#   For frame f, sample j (0..bs-1), with f0 linearly interpolated inside the frame:
#     x(f, j)  = p0[f] + [ (j+1)*f0l[f] + (f0r[f]-f0l[f]) * j(j+1)/(2*bs) ] / sr     (cycles)
#     phase    = 2*pi * wrap(x),   out = sum_k amp_k(f,j) * sin((k+1)*phase)
#     amp_k    = al[f,k] + (ar[f,k]-al[f,k]) * j/bs                                  (fused upsample)
#   Layout: frames on lanes (128-frame chunks), block_size / harmonics on sublanes.
#   Each grid step covers CH chunks; pl.loop iterates them to bound vreg pressure.
# --------------------------------------------------------------------------------------
def make_sin_kernel(n_harmonics, block_size, chunks, sampling_rate):
    inv_bs = 1.0 / float(block_size)
    inv_sr = 1.0 / float(sampling_rate)
    two_pi = 2.0 * np.pi
    resync = 32   # re-anchor the Chebyshev recurrence with an exact sin every 32 harmonics

    def kernel(p0_ref, f0l_ref, f0r_ref, al_ref, ar_ref, o_ref, ph_ref):
        j = lax.broadcasted_iota(jnp.int32, (block_size, 1), 0).astype(jnp.float32)
        c1 = j + 1.0                                 # (bs,1) inclusive-cumsum count
        c2 = j * (j + 1.0) * (0.5 * inv_bs)          # (bs,1) triangular term / bs
        w = j * inv_bs                               # (bs,1) amplitude-interp weight

        @pl.loop(0, chunks)
        def _(c):
            p0 = p0_ref[0, c]                        # (1, LC) wrapped frame phase prefix (cycles)
            f0l = f0l_ref[0, c]                      # (1, LC)
            df = f0r_ref[0, c] - f0l
            x = p0 + (c1 * f0l + c2 * df) * inv_sr   # (bs, LC) phase in cycles
            x = x - jnp.round(x)                     # wrap
            ph = two_pi * x
            ph_ref[0, c] = ph

            s1 = jnp.sin(ph)
            cc = 2.0 * jnp.cos(ph)

            # hoisted amplitude loads: one bf16->f32 convert per chunk, FMA per harmonic
            al = al_ref[0, c].astype(jnp.float32)    # (H, LC)
            d = ar_ref[0, c].astype(jnp.float32) - al

            def amp(k):                              # (bs, LC) fused linear-interp upsample
                return al[k:k + 1] + d[k:k + 1] * w

            acc = amp(0) * s1
            s_prev = jnp.zeros_like(s1)              # sin(0 * ph)
            s_cur = s1                               # sin(1 * ph)
            for k in range(1, n_harmonics):          # static unroll over harmonics (k+1)
                if k % resync == 0:                  # periodic exact re-sync for large H
                    t = (k + 1.0) * x
                    s_next = jnp.sin(two_pi * (t - jnp.round(t)))
                else:
                    s_next = cc * s_cur - s_prev
                acc = acc + amp(k) * s_next
                s_prev, s_cur = s_cur, s_next
            o_ref[0, c] = acc

    return kernel


def sinusoid_synth(prefix, f0l, f0r, ampl, ampr, sampling_rate, block_size,
                   lane_chunk=128, chunks_per_step=16):
    """prefix/f0l/f0r: (B, nF) f32; ampl/ampr: (B, nF, H). Returns (audio (B,T), phase (B,T,1))."""
    B, nF = prefix.shape
    H = ampl.shape[-1]
    bs = block_size
    LC = lane_chunk

    nC = _round_up(nF, LC) // LC                      # number of 128-frame chunks
    CH = min(chunks_per_step, nC)                     # chunks folded into one grid step
    if nC >= 2:                                       # keep >=2 frame-axis grid steps (megacore)
        CH = min(CH, max(1, nC // 2))
    nC_pad = _round_up(nC, CH)
    F_pad = nC_pad * LC

    def rows(v):                                      # (B, nF) -> (B, nC_pad, 1, LC)
        return jnp.pad(v, ((0, 0), (0, F_pad - nF))).reshape(B, nC_pad, 1, LC)

    def amps(v):                                      # (B, nF, H) -> (B, nC_pad, H, LC) bf16
        v = jnp.pad(v.astype(jnp.bfloat16), ((0, 0), (0, F_pad - nF), (0, 0)))
        return jnp.transpose(v.reshape(B, nC_pad, LC, H), (0, 1, 3, 2))

    out, ph = pl.pallas_call(
        make_sin_kernel(H, bs, CH, sampling_rate),
        out_shape=(jax.ShapeDtypeStruct((B, nC_pad, bs, LC), jnp.float32),
                   jax.ShapeDtypeStruct((B, nC_pad, bs, LC), jnp.float32)),
        grid=(B, nC_pad // CH),
        in_specs=[
            pl.BlockSpec((1, CH, 1, LC), lambda b, t: (b, t, 0, 0)),   # phase prefix
            pl.BlockSpec((1, CH, 1, LC), lambda b, t: (b, t, 0, 0)),   # f0 left
            pl.BlockSpec((1, CH, 1, LC), lambda b, t: (b, t, 0, 0)),   # f0 right
            pl.BlockSpec((1, CH, H, LC), lambda b, t: (b, t, 0, 0)),   # amp left (bf16)
            pl.BlockSpec((1, CH, H, LC), lambda b, t: (b, t, 0, 0)),   # amp right (bf16)
        ],
        out_specs=(pl.BlockSpec((1, CH, bs, LC), lambda b, t: (b, t, 0, 0)),
                   pl.BlockSpec((1, CH, bs, LC), lambda b, t: (b, t, 0, 0))),
        compiler_params=pltpu.CompilerParams(
            dimension_semantics=("parallel", "parallel"),
            vmem_limit_bytes=_vmem_limit_bytes()),
    )(rows(prefix), rows(f0l), rows(f0r), amps(ampl), amps(ampr))

    # (B, nC, bs, LC) -> time-major (B, T); padded frames land at the tail and are sliced off.
    T = nF * bs
    audio = jnp.transpose(out, (0, 1, 3, 2)).reshape(B, F_pad * bs)[:, :T]
    phase = jnp.transpose(ph, (0, 1, 3, 2)).reshape(B, F_pad * bs)[:, :T, None]
    return audio, phase


# --------------------------------------------------------------------------------------
# Plain-JAX glue (DSP helpers; FFT has no Pallas op)
# --------------------------------------------------------------------------------------
def _hann_window_sym(L):
    n = jnp.arange(L, dtype=jnp.float32)
    return 0.5 * (1.0 - jnp.cos(2.0 * np.pi * n / (L - 1)))


def _bartlett_window_periodic(L):
    n = jnp.arange(L, dtype=jnp.float32)
    return 1.0 - jnp.abs(2.0 * n / L - 1.0)


def frequency_impulse_response(magnitudes, hann_window=True):
    ir = jnp.fft.irfft(magnitudes, axis=-1)
    ir = jnp.fft.fftshift(ir, axes=-1)
    if hann_window:
        ir = ir * _hann_window_sym(ir.shape[-1])
    return ir.astype(jnp.float32)


def fft_convolve(audio, ir):
    B, T = audio.shape
    _, n_ir_frames, ir_size = ir.shape
    hop = T // n_ir_frames
    frame = 2 * hop
    padded = jnp.pad(audio, ((0, 0), (hop, hop)))
    n_frames = n_ir_frames + 1
    idx = jnp.arange(n_frames)[:, None] * hop + jnp.arange(frame)[None, :]
    audio_frames = padded[:, idx] * _bartlett_window_periodic(frame)
    fft_size = frame + ir_size - 1
    afft = jnp.fft.rfft(audio_frames, n=fft_size, axis=-1)
    ir_cat = jnp.concatenate([ir, ir[:, -1:, :]], axis=1)
    bfft = jnp.fft.rfft(ir_cat, n=fft_size, axis=-1)
    frames_out = jnp.fft.irfft(afft * bfft, n=fft_size, axis=-1)
    out_len = (n_frames - 1) * hop + fft_size
    out = jnp.zeros((B, out_len), dtype=jnp.float32)
    for i in range(n_frames):
        out = out.at[:, i * hop:i * hop + fft_size].add(frames_out[:, i])
    out = out[:, hop:]                                   # padding='same', delay_compensation=-1
    start = (ir_size - 1) // 2 - 1
    return out[:, start:start + T]


def frequency_filter(audio, magnitudes, hann_window=True):
    ir = frequency_impulse_response(magnitudes, hann_window=hann_window)
    return fft_convolve(audio, ir)


# --------------------------------------------------------------------------------------
# Sins forward
# --------------------------------------------------------------------------------------
def init_params(key, n_in, hidden, n_out):
    k1, k2 = jax.random.split(key)
    return dict(
        w1=jax.random.normal(k1, (n_in, hidden), jnp.float32) / np.sqrt(n_in),
        b1=jnp.zeros((1, hidden), jnp.float32),
        w2=jax.random.normal(k2, (hidden, n_out), jnp.float32) / np.sqrt(hidden),
        b2=jnp.zeros((1, n_out), jnp.float32),
    )


def sins_forward(params, mel_frames, f0_frames, cfg, noise_key, initial_phase=None):
    sr = cfg["sampling_rate"]
    bs = cfg["block_size"]
    nH = cfg["n_harmonics"]
    nA = cfg["n_mag_allpass"]
    nN = cfg["n_mag_noise"]
    B, nF, _ = f0_frames.shape
    T = nF * bs

    # Frame-level phase bookkeeping only; per-sample phase is generated in closed form inside
    # the Pallas synthesis kernel (no sample-rate upsample / cumsum / phase DMA).
    # TODO(synk): PyTorch accumulates phase in float64; TPU has no f64, so the frame prefix is
    #             an f32 cumsum of per-frame wrapped increments (drift bounded, not bit-exact).
    f0l = f0_frames[..., 0]                                          # (B, nF)
    f0r = jnp.concatenate([f0l[:, 1:], f0l[:, -1:]], axis=1)
    df = f0r - f0l
    delta = (bs * f0l + 0.5 * (bs - 1) * df) / sr                    # cycles per frame
    delta = delta - jnp.round(delta)                                 # mod-1 invariant, limits growth
    prefix = jnp.cumsum(delta, axis=-1) - delta                      # exclusive frame prefix
    if initial_phase is None:
        initial_phase = jnp.zeros((B, 1, 1), jnp.float32)
    prefix = prefix + initial_phase[:, :, 0] / (2.0 * np.pi)
    prefix = prefix - jnp.round(prefix)                              # wrapped prefix, in cycles

    x0 = prefix + f0l / sr
    phase_frames = (2.0 * np.pi) * (x0 - jnp.round(x0))              # phase at frame starts

    # Mel2Control stand-in (Pallas fused MLP + exp/tanh/remove_above_fmax epilogue)
    ctrl_in = jnp.concatenate([mel_frames, phase_frames[..., None]], axis=-1)
    amplitudes_frames, group_delay, noise_param = mel2ctrl_fused(
        ctrl_in, f0_frames, params, sr, nH, nA, nN)

    # sinusoid synthesis (Pallas: in-kernel phase, fused upsample, Chebyshev harmonic stack;
    # max_upsample_dim chunking in the reference is a memory optimisation with identical math)
    ampr = jnp.concatenate([amplitudes_frames[:, 1:], amplitudes_frames[:, -1:]], axis=1)
    sinusoids, phase = sinusoid_synth(prefix, f0l, f0r, amplitudes_frames, ampr, sr, bs)

    # spectral filtering (jnp.fft)
    harmonic = frequency_filter(
        sinusoids, jnp.exp(1j * jnp.cumsum(group_delay, axis=-1)), hann_window=False)
    noise = jax.random.uniform(noise_key, (B, T), jnp.float32) * 2.0 - 1.0
    noise = frequency_filter(
        noise, noise_param.astype(jnp.float32).astype(jnp.complex64), hann_window=True)
    signal = harmonic + noise
    return signal, phase, (harmonic, noise)


# --------------------------------------------------------------------------------------
if __name__ == "__main__":
    cfg = dict(sampling_rate=16000, block_size=16,
               n_harmonics=16, n_mag_allpass=8, n_mag_noise=8, n_mels=15)
    B, n_frames = 2, 8

    key = jax.random.PRNGKey(0)
    k_mel, k_f0, k_par, k_noise = jax.random.split(key, 4)
    mel_frames = jax.random.normal(k_mel, (B, n_frames, cfg["n_mels"]), jnp.float32)
    f0_frames = 100.0 + 300.0 * jax.random.uniform(k_f0, (B, n_frames, 1), jnp.float32)

    n_out = cfg["n_harmonics"] + cfg["n_mag_allpass"] + cfg["n_mag_noise"]
    params = init_params(k_par, n_in=cfg["n_mels"] + 1, hidden=32, n_out=n_out)

    signal, phase, (harmonic, noise) = sins_forward(params, mel_frames, f0_frames, cfg, k_noise)
    jax.block_until_ready((signal, phase, harmonic, noise))

    T = n_frames * cfg["block_size"]
    assert signal.shape == (B, T) and phase.shape == (B, T, 1)
    assert harmonic.shape == (B, T) and noise.shape == (B, T)
    assert bool(jnp.all(jnp.isfinite(signal)))
    print("KERNEL_OK")
</pallas_src>

<mosaic_0001>
module attributes {stable_mosaic.version = 11 : i64} {
  func.func @kernel(%arg0: i32, %arg1: memref<16x128xbf16, #tpu.memory_space<vmem>>, %arg2: memref<16x1xf32, #tpu.memory_space<vmem>>, %arg3: memref<128x128xbf16, #tpu.memory_space<vmem>>, %arg4: memref<1x128xf32, #tpu.memory_space<vmem>>, %arg5: memref<128x128xbf16, #tpu.memory_space<vmem>>, %arg6: memref<1x128xf32, #tpu.memory_space<vmem>>, %arg7: memref<16x128xbf16, #tpu.memory_space<vmem>>, %arg8: memref<16x128xf32, #tpu.memory_space<vmem>>) attributes {dimension_semantics = [#tpu.dimension_semantics<parallel>], iteration_bounds = array<i64: 1>, scalar_prefetch = 0 : i64, scratch_operands = 0 : i64, tpu.core_type = #tpu.core_type<tc>, window_params = [{transform_indices = @transform_0, window_bounds = array<i64: 16, 128>}, {transform_indices = @transform_1, window_bounds = array<i64: 16, 1>}, {pipeline_mode = #tpu.pipeline_mode<synchronous>, transform_indices = @transform_2, window_bounds = array<i64: 128, 128>}, {pipeline_mode = #tpu.pipeline_mode<synchronous>, transform_indices = @transform_3, window_bounds = array<i64: 1, 128>}, {pipeline_mode = #tpu.pipeline_mode<synchronous>, transform_indices = @transform_4, window_bounds = array<i64: 128, 128>}, {pipeline_mode = #tpu.pipeline_mode<synchronous>, transform_indices = @transform_5, window_bounds = array<i64: 1, 128>}, {transform_indices = @transform_6, window_bounds = array<i64: 16, 128>}, {transform_indices = @transform_7, window_bounds = array<i64: 16, 128>}]} {
    %c0 = arith.constant 0 : index
    %c0_0 = arith.constant 0 : index
    %0 = vector.load %arg1[%c0, %c0_0] : memref<16x128xbf16, #tpu.memory_space<vmem>>, vector<16x128xbf16>
    %c0_1 = arith.constant 0 : index
    %c0_2 = arith.constant 0 : index
    %1 = vector.load %arg3[%c0_1, %c0_2] : memref<128x128xbf16, #tpu.memory_space<vmem>>, vector<128x128xbf16>
    %cst = arith.constant dense<0.000000e+00> : vector<16x128xf32>
    %2 = tpu.matmul %0, %1, %cst {dimension_numbers = #tpu.dot_dimension_numbers<[1], [0], [0], [1], [0, 0, 1, 1], [], []>} : vector<16x128xbf16>, vector<128x128xbf16>, vector<16x128xf32> -> vector<16x128xf32>
    %c0_3 = arith.constant 0 : index
    %c0_4 = arith.constant 0 : index
    %3 = vector.load %arg4[%c0_3, %c0_4] : memref<1x128xf32, #tpu.memory_space<vmem>>, vector<1x128xf32>
    %4 = vector.broadcast %3 : vector<1x128xf32> to vector<16x128xf32>
    %5 = arith.addf %2, %4 : vector<16x128xf32>
    %cst_5 = arith.constant 0.000000e+00 : f32
    %6 = vector.broadcast %cst_5 : f32 to vector<16x128xf32>
    %7 = arith.cmpf ogt, %5, %6 : vector<16x128xf32>
    %cst_6 = arith.constant 0.00999999977 : f32
    %8 = vector.broadcast %cst_6 : f32 to vector<16x128xf32>
    %9 = arith.mulf %8, %5 : vector<16x128xf32>
    %10 = arith.select %7, %5, %9 : vector<16x128xi1>, vector<16x128xf32>
    %11 = arith.truncf %10 : vector<16x128xf32> to vector<16x128xbf16>
    %c0_7 = arith.constant 0 : index
    %c0_8 = arith.constant 0 : index
    %12 = vector.load %arg5[%c0_7, %c0_8] : memref<128x128xbf16, #tpu.memory_space<vmem>>, vector<128x128xbf16>
    %cst_9 = arith.constant dense<0.000000e+00> : vector<16x128xf32>
    %13 = tpu.matmul %11, %12, %cst_9 {dimension_numbers = #tpu.dot_dimension_numbers<[1], [0], [0], [1], [0, 0, 1, 1], [], []>} : vector<16x128xbf16>, vector<128x128xbf16>, vector<16x128xf32> -> vector<16x128xf32>
    %c0_10 = arith.constant 0 : index
    %c0_11 = arith.constant 0 : index
    %14 = vector.load %arg6[%c0_10, %c0_11] : memref<1x128xf32, #tpu.memory_space<vmem>>, vector<1x128xf32>
    %15 = vector.broadcast %14 : vector<1x128xf32> to vector<16x128xf32>
    %16 = arith.addf %13, %15 : vector<16x128xf32>
    %17 = tpu.iota {dimensions = array<i32: 1>} : vector<16x128xi32>
    %c0_12 = arith.constant 0 : index
    %c0_13 = arith.constant 0 : index
    %18 = vector.load %arg2[%c0_12, %c0_13] : memref<16x1xf32, #tpu.memory_space<vmem>>, vector<16x1xf32>
    %19 = math.exp %16 : vector<16x128xf32>
    %cst_14 = arith.constant 7.812500e-03 : f32
    %20 = vector.broadcast %cst_14 : f32 to vector<16x128xf32>
    %21 = arith.mulf %19, %20 : vector<16x128xf32>
    %c1_i32 = arith.constant 1 : i32
    %22 = vector.broadcast %c1_i32 : i32 to vector<16x128xi32>
    %23 = arith.addi %17, %22 : vector<16x128xi32>
    %24 = arith.sitofp %23 : vector<16x128xi32> to vector<16x128xf32>
    %25 = vector.broadcast %18 : vector<16x1xf32> to vector<16x128xf32>
    %26 = arith.mulf %25, %24 : vector<16x128xf32>
    %cst_15 = arith.constant 8.000000e+03 : f32
    %27 = vector.broadcast %cst_15 : f32 to vector<16x128xf32>
    %28 = arith.cmpf olt, %26, %27 : vector<16x128xf32>
    %29 = arith.extui %28 : vector<16x128xi1> to vector<16x128xi32>
    %30 = arith.sitofp %29 : vector<16x128xi32> to vector<16x128xf32>
    %cst_16 = arith.constant 1.000000e-07 : f32
    %31 = vector.broadcast %cst_16 : f32 to vector<16x128xf32>
    %32 = arith.addf %30, %31 : vector<16x128xf32>
    %c16_i32 = arith.constant 16 : i32
    %33 = vector.broadcast %c16_i32 : i32 to vector<16x128xi32>
    %34 = arith.cmpi slt, %17, %33 : vector<16x128xi32>
    %35 = arith.mulf %21, %32 : vector<16x128xf32>
    %36 = arith.select %34, %35, %21 : vector<16x128xi1>, vector<16x128xf32>
    %37 = arith.truncf %36 : vector<16x128xf32> to vector<16x128xbf16>
    %c0_17 = arith.constant 0 : index
    %c0_18 = arith.constant 0 : index
    %38 = vector.load %arg7[%c0_17, %c0_18] : memref<16x128xbf16, #tpu.memory_space<vmem>>, vector<16x128xbf16>
    tpu.vector_store %arg7[%c0_17, %c0_18], %37 {strides = array<i32>} : memref<16x128xbf16, #tpu.memory_space<vmem>>, vector<16x128xbf16>,
    %39 = arith.mulf %19, %19 : vector<16x128xf32>
    %cst_19 = arith.constant 1.000000e+00 : f32
    %40 = vector.broadcast %cst_19 : f32 to vector<16x128xf32>
    %41 = arith.addf %39, %40 : vector<16x128xf32>
    %42 = tpu.reciprocal %41 {approx = true} : vector<16x128xf32> -> vector<16x128xf32>
    %cst_20 = arith.constant 2.000000e+00 : f32
    %43 = vector.broadcast %cst_20 : f32 to vector<16x128xf32>
    %44 = arith.mulf %43, %42 : vector<16x128xf32>
    %cst_21 = arith.constant 1.000000e+00 : f32
    %45 = vector.broadcast %cst_21 : f32 to vector<16x128xf32>
    %46 = arith.subf %45, %44 : vector<16x128xf32>
    %cst_22 = arith.constant 3.14159274 : f32
    %47 = vector.broadcast %cst_22 : f32 to vector<16x128xf32>
    %48 = arith.mulf %47, %46 : vector<16x128xf32>
    %c0_23 = arith.constant 0 : index
    %c0_24 = arith.constant 0 : index
    %49 = vector.load %arg8[%c0_23, %c0_24] : memref<16x128xf32, #tpu.memory_space<vmem>>, vector<16x128xf32>
    tpu.vector_store %arg8[%c0_23, %c0_24], %48 {strides = array<i32>} : memref<16x128xf32, #tpu.memory_space<vmem>>, vector<16x128xf32>,
    return
  }
  func.func @transform_0(%arg0: i32) -> (i32, i32) {
    %c0_i32 = arith.constant 0 : i32
    %c0_i32_0 = arith.constant 0 : i32
    return %arg0, %c0_i32 : i32, i32
  }
  func.func @transform_1(%arg0: i32) -> (i32, i32) {
    %c0_i32 = arith.constant 0 : i32
    %c0_i32_0 = arith.constant 0 : i32
    return %arg0, %c0_i32 : i32, i32
  }
  func.func @transform_2(%arg0: i32) -> (i32, i32) {
    %c0_i32 = arith.constant 0 : i32
    %c0_i32_0 = arith.constant 0 : i32
    %c0_i32_1 = arith.constant 0 : i32
    return %c0_i32, %c0_i32_0 : i32, i32
  }
  func.func @transform_3(%arg0: i32) -> (i32, i32) {
    %c0_i32 = arith.constant 0 : i32
    %c0_i32_0 = arith.constant 0 : i32
    %c0_i32_1 = arith.constant 0 : i32
    return %c0_i32, %c0_i32_0 : i32, i32
  }
  func.func @transform_4(%arg0: i32) -> (i32, i32) {
    %c0_i32 = arith.constant 0 : i32
    %c0_i32_0 = arith.constant 0 : i32
    %c0_i32_1 = arith.constant 0 : i32
    return %c0_i32, %c0_i32_0 : i32, i32
  }
  func.func @transform_5(%arg0: i32) -> (i32, i32) {
    %c0_i32 = arith.constant 0 : i32
    %c0_i32_0 = arith.constant 0 : i32
    %c0_i32_1 = arith.constant 0 : i32
    return %c0_i32, %c0_i32_0 : i32, i32
  }
  func.func @transform_6(%arg0: i32) -> (i32, i32) {
    %c0_i32 = arith.constant 0 : i32
    %c0_i32_0 = arith.constant 0 : i32
    return %arg0, %c0_i32 : i32, i32
  }
  func.func @transform_7(%arg0: i32) -> (i32, i32) {
    %c0_i32 = arith.constant 0 : i32
    %c0_i32_0 = arith.constant 0 : i32
    return %arg0, %c0_i32 : i32, i32
  }
}

</mosaic_0001>

<bundles_post_ra>
// kernel: tpu_custom_call.1
= control target key start
LH: loop header
LB: loop body
LE: loop exit
PB: predicated region body
PF: predicated region fallthrough
CT: control target
= control target key end

     0   :  { %13 = vsyncpa [#allocation3], 0  ;;  %s754_s0 = inlined_call_operand.vmem [shape: bf16[16,128], index: 0, kind: input, shape index: {}]   ;;  %s755_s1 = inlined_call_operand.vmem [shape: f32[16,1], index: 1, kind: input, shape index: {}]   ;;  %s756_s2 = inlined_call_operand.hbm [shape: bf16[128,128], index: 2, kind: input, shape index: {}]   ;;  %s757_s3 = inlined_call_operand.vmem [shape: f32[1,128], index: 3, kind: input, shape index: {}]   ;;  %s758_s4 = inlined_call_operand.hbm [shape: bf16[128,128], index: 4, kind: input, shape index: {}]   ;;  %s759_s5 = inlined_call_operand.vmem [shape: f32[1,128], index: 5, kind: input, shape index: {}]   ;;  %s760_s6 = inlined_call_operand.hbm [shape: bf16[16,128], index: 6, kind: output, shape index: {0}]   ;;  %s761_s7 = inlined_call_operand.hbm [shape: f32[16,128], index: 7, kind: output, shape index: {1}]  }
   0x1   :  { %14 = vsyncpa [#allocation6], 0 }
   0x2   :  { %15 = vsyncpa [#allocation4], 0 }
   0x3   :  { %16 = vsyncpa [#allocation9], 0  ;;  %s611_s24 = smov [#allocation2]   ;;  %s515_s28 = scalar_lea.hbm %s756_s2, 1024 }
   0x4   :  { %s26_s25 = sshll.u32 %s611_s24, 4  ;;  %p516_p0 = scmp.ne.s32.totalorder %s756_s2, %s515_s28  ;;  %s27_s25 = int_to_ptr.vmem [resolvable:$true] %s26_s25 }
   0x5   :  { %p519_p1 = scmp.lt.u32.totalorder %s515_s28, %s756_s2 }
   0x7   :  { %p521_p2 = pnand %p519_p1, %p516_p0 }
   0x9   :  { %524 = shalt.err (!%p521_p2)
}
   0xa   :  { %s525_s10 = scalar_lea.vmem %s27_s25, 1024  ;;  %p530_p4 = scmp.lt.s32.totalorder %s27_s25, %s27_s25 }
   0xb   :  { %p526_p3 = scmp.ne.s32.totalorder %s27_s25, %s525_s10  ;;  %p531_p5 = scmp.lt.s32.totalorder %s525_s10, %s525_s10 }
   0xd   :  { %p532_p6 = por %p531_p5, %p530_p4 }
   0xf   :  { %p533_p7 = pnand %p532_p6, %p526_p3 }
  0x11   :  { %536 = shalt.err (!%p533_p7)
}
  0x12   :  { %s612_s11 = smov 64   ;;  %s613_s12 = smov 4  }
  0x13   :  { %32 = dma.hbm_to_vmem [thread:$0]  %s756_s2, 1024, %s27_s25, [#allocation3], %s612_s11, %s612_s11, %s613_s12  }
  0x14   :  { %s614_s15 = smov [#allocation5]   ;;  %s537_s19 = scalar_lea.hbm %s758_s4, 1024 }
  0x15   :  { %s40_s16 = sshll.u32 %s614_s15, 4  ;;  %p538_p8 = scmp.ne.s32.totalorder %s758_s4, %s537_s19  ;;  %s41_s16 = int_to_ptr.vmem [resolvable:$true] %s40_s16 }
  0x16   :  { %p541_p9 = scmp.lt.u32.totalorder %s537_s19, %s758_s4 }
  0x18   :  { %p543_p10 = pnand %p541_p9, %p538_p8 }
  0x1a   :  { %546 = shalt.err (!%p543_p10)
}
  0x1b   :  { %s547_s24 = scalar_lea.vmem %s41_s16, 1024  ;;  %p552_p12 = scmp.lt.s32.totalorder %s41_s16, %s41_s16 }
  0x1c   :  { %p548_p11 = scmp.ne.s32.totalorder %s41_s16, %s547_s24  ;;  %p553_p13 = scmp.lt.s32.totalorder %s547_s24, %s547_s24 }
  0x1e   :  { %p554_p0 = por %p553_p13, %p552_p12 }
  0x20   :  { %p555_p1 = pnand %p554_p0, %p548_p11 }
  0x22   :  { %558 = shalt.err (!%p555_p1)
}
  0x23   :  { %46 = dma.hbm_to_vmem [thread:$0]  %s758_s4, 1024, %s41_s16, [#allocation6], %s612_s11, %s612_s11, %s613_s12  }
  0x24   :  { %603 = dma.done.wait [#allocation3], 1024  }
  0x25   :  { %604 = vsyncadd [#allocation3], 4294966272 }
  0x26   :  { %605 = dma.done.wait [#allocation6], 1024  }
  0x27   :  { %606 = vsyncadd [#allocation6], 4294966272  ;;  %v615_v0 = vmov 0.0   ;;  %vm616_vm0 = vmmov 0   ;;  %v490_v1 = vld [vmem:[#allocation2] sm:$0xff]   ;;  %v491_v2 = vld [vmem:[#allocation2 + $0x8] sm:$0xff]   ;;  %v295_v33 = vlaneseq }
  0x28   :  { %438 = vmatprep.subr.bf16.mxu0 %v615_v0  ;;  %454 = vmatprep.mubr.msk.bf16.mxu0 %vm616_vm0, %v615_v0  ;;  %v492_v3 = vld [vmem:[#allocation2 + $0x10] sm:$0xff]   ;;  %v499_v4 = vld [vmem:[#allocation5] sm:$0xff]   ;;  %v493_v5 = vld [vmem:[#allocation2 + $0x18] sm:$0xff]   ;;  %v617_v19 = vmov 0  }
  0x29   :  { %458 = vmatprep.subr.bf16.mxu1 %v615_v0  ;;  %474 = vmatprep.mubr.msk.bf16.mxu1 %vm616_vm0, %v615_v0  ;;  %v500_v6 = vld [vmem:[#allocation5 + $0x8] sm:$0xff]   ;;  %v494_v7 = vld [vmem:[#allocation2 + $0x20] sm:$0xff]   ;;  %v501_v8 = vld [vmem:[#allocation5 + $0x10] sm:$0xff]   ;;  %v296_v34 = vand.u32 127, %v295_v33 }
  0x2a   :  { %439 = vmatpush3.bf16.msra.mxu0 %v490_v1  ;;  %459 = vmatpush3.bf16.msra.mxu1 %v499_v4  ;;  %v495_v9 = vld [vmem:[#allocation2 + $0x28] sm:$0xff]   ;;  %v502_v10 = vld [vmem:[#allocation5 + $0x18] sm:$0xff]   ;;  %v496_v11 = vld [vmem:[#allocation2 + $0x30] sm:$0xff]  }
  0x2b   :  { %440 = vmatprep.subr.bf16.mxu0 %v615_v0  ;;  %460 = vmatprep.subr.bf16.mxu1 %v615_v0  ;;  %v503_v12 = vld [vmem:[#allocation5 + $0x20] sm:$0xff]   ;;  %v497_v13 = vld [vmem:[#allocation2 + $0x38] sm:$0xff]   ;;  %v504_v14 = vld [vmem:[#allocation5 + $0x28] sm:$0xff]   ;;  %v305_v35 = vadd.s32 1, %v296_v34  ;;  %vm327_vm5 = vcmp.lt.s32.totalorder %v296_v34, 16 }
  0x2c   :  { %v498_v15 = vld [vmem:[%s754_s0] sm:$0xff]   ;;  %v505_v16 = vld [vmem:[#allocation5 + $0x30] sm:$0xff]   ;;  %v506_v17 = vld [vmem:[#allocation5 + $0x38] sm:$0xff]   ;;  %489 = vset.pattern.permute.xlu0 %v617_v19 }
  0x2d   :  { %v297_v18 = vld [vmem:[%s755_s1] sm:$0xff]  ;;  %v298_v20 = vld [vmem:[%s755_s1 + $0x8] sm:$0xff]  ;;  %v306_v39 = vcvt.s32.f32 %v305_v35 }
  0x2e   :  { %441 = vmatpush3.bf16.msra.mxu0 %v491_v2  ;;  %461 = vmatpush3.bf16.msra.mxu1 %v500_v6  ;;  %v390_v21 = vld [vmem:[%s757_s3] ss:$0 sm:$0xff] }
  0x2f   :  { %442 = vmatprep.subr.bf16.mxu0 %v615_v0  ;;  %462 = vmatprep.subr.bf16.mxu1 %v615_v0  ;;  %v400_v37 = vld [vmem:[%s759_s5] ss:$0 sm:$0xff]  ;;  %s618_s5 = smov [#allocation7]  }
  0x30   :  { %309 = vperm.xlu0 %489, %v297_v18   ;;  %s361_s9 = sshll.u32 %s618_s5, 4  ;;  %s362_s9 = int_to_ptr.vmem [resolvable:$true] %s361_s9 }
  0x31   :  { %s559_s10 = scalar_lea.vmem %s362_s9, 128  ;;  %p564_p3 = scmp.lt.s32.totalorder %s362_s9, %s362_s9 }
  0x32   :  { %443 = vmatpush3.bf16.msra.mxu0 %v492_v3  ;;  %463 = vmatpush3.bf16.msra.mxu1 %v501_v8  ;;  %p560_p2 = scmp.ne.s32.totalorder %s362_s9, %s559_s10  ;;  %p565_p4 = scmp.lt.s32.totalorder %s559_s10, %s559_s10 }
  0x33   :  { %444 = vmatprep.subr.bf16.mxu0 %v615_v0  ;;  %464 = vmatprep.subr.bf16.mxu1 %v615_v0 }
  0x34   :  { %314 = vperm.xlu0 %489, %v298_v20   ;;  %p566_p5 = por %p565_p4, %p564_p3 }
  0x36   :  { %445 = vmatpush3.bf16.msra.mxu0 %v493_v5  ;;  %465 = vmatpush3.bf16.msra.mxu1 %v502_v10  ;;  %p567_p6 = pnand %p566_p5, %p560_p2 }
  0x37   :  { %446 = vmatprep.subr.bf16.mxu0 %v615_v0  ;;  %466 = vmatprep.subr.bf16.mxu1 %v615_v0 }
  0x3a   :  { %447 = vmatpush3.bf16.msra.mxu0 %v494_v7  ;;  %467 = vmatpush3.bf16.msra.mxu1 %v503_v12 }
  0x3b   :  { %448 = vmatprep.subr.bf16.mxu0 %v615_v0  ;;  %468 = vmatprep.subr.bf16.mxu1 %v615_v0 }
  0x3e   :  { %449 = vmatpush3.bf16.msra.mxu0 %v495_v9  ;;  %469 = vmatpush3.bf16.msra.mxu1 %v504_v14 }
  0x3f   :  { %450 = vmatprep.subr.bf16.mxu0 %v615_v0  ;;  %470 = vmatprep.subr.bf16.mxu1 %v615_v0 }
  0x42   :  { %451 = vmatpush3.bf16.msra.mxu0 %v496_v11  ;;  %471 = vmatpush3.bf16.msra.mxu1 %v505_v16 }
  0x43   :  { %452 = vmatprep.subr.bf16.mxu0 %v615_v0  ;;  %472 = vmatprep.subr.bf16.mxu1 %v615_v0 }
  0x46   :  { %453 = vmatpush3.bf16.msra.mxu0 %v497_v13  ;;  %473 = vmatpush3.bf16.msra.mxu1 %v506_v17 }
  0x49   :  { %455 = vmatmul.mubr.bf16.vlgmr.msra.gmra.mrb[0].mxu0 %v498_v15 }
  0xaf   :  { %v310_v36 = vpop.permute.xlu0 %309 }
  0xb0   :  { %v317_v47 = vmul.f32 %v310_v36, %v306_v39 }
  0xb2   :  { %vm319_vm3 = vcmp.lt.f32.partialorder %v317_v47, 8000.0 }
  0xb3   :  { %v315_v46 = vpop.permute.xlu0 %314  ;;  %v409_v50 = vsel %vm319_vm3, 1.0, %v615_v0 }
  0xb4   :  { %v318_v49 = vmul.f32 %v315_v46, %v306_v39  ;;  %v325_v52 = vadd.f32 1e-07, %v409_v50 }
  0xb6   :  { %vm320_vm4 = vcmp.lt.f32.partialorder %v318_v49, 8000.0 }
  0xb7   :  { %v410_v51 = vsel %vm320_vm4, 1.0, %v615_v0 }
  0xb8   :  { %v326_v56 = vadd.f32 1e-07, %v410_v51 }
 0x11c   :  { %v169_v22 = vpop.f32.mrb[0].mxu0 }
 0x11d   :  { %v170_v23 = vadd.f32 %v390_v21, %v169_v22  ;;  %v456_v24 = vpop.f32.mrb[1].mxu0 }
 0x11e   :  { %v172_v25 = vpop.f32.mrb[2].mxu0 }
 0x11f   :  { %v178_v26 = vmul.f32 0.01, %v170_v23  ;;  %v173_v27 = vadd.f32 %v390_v21, %v172_v25  ;;  %v457_v28 = vpop.f32.mrb[3].mxu0  ;;  %vm176_vm1 = vcmp.gt.f32.partialorder %v170_v23, 0.0 }
 0x121   :  { %vm177_vm2 = vcmp.gt.f32.partialorder %v173_v27, 0.0  ;;  %v179_v29 = vmul.f32 0.01, %v173_v27  ;;  %v180_v30 = vsel %vm176_vm1, %v170_v23, %v178_v26 }
 0x123   :  { %v181_v31 = vsel %vm177_vm2, %v173_v27, %v179_v29 }
 0x124   :  { %v182_v32 = vpack.c.bf16 %v181_v31, %v180_v30 }
 0x126   :  { %475 = vmatmul.mubr.bf16.vlgmr.msra.gmra.mrb[0].mxu1 %v182_v32 }
 0x1f9   :  { %v288_v38 = vpop.f32.mrb[0].mxu1 }
 0x1fa   :  { %v289_v40 = vadd.f32 %v400_v37, %v288_v38  ;;  %v476_v41 = vpop.f32.mrb[1].mxu1 }
 0x1fb   :  { %v291_v42 = vpop.f32.mrb[2].mxu1 }
 0x1fc   :  { %v299_v43 = vmul.f32 1.442695, %v289_v40  ;;  %v292_v44 = vadd.f32 %v400_v37, %v291_v42  ;;  %v477_v45 = vpop.f32.mrb[3].mxu1 }
 0x1fe   :  { %507 = vpow2.f32 %v299_v43  ;;  %v301_v48 = vmul.f32 1.442695, %v292_v44 }
 0x200   :  { %509 = vpow2.f32 %v301_v48 }
 0x208   :  { %v508_v53 = vpop.eup %507 }
 0x209   :  { %v342_v54 = vmul.f32 %v508_v53, %v508_v53  ;;  %v303_v55 = vmul.f32 0.0078125, %v508_v53 }
 0x20a   :  { %v510_v57 = vpop.eup %509 }
 0x20b   :  { %v344_v58 = vadd.f32 1.0, %v342_v54  ;;  %v343_v59 = vmul.f32 %v510_v57, %v510_v57  ;;  %v328_v60 = vmul.f32 %v325_v52, %v303_v55  ;;  %v304_v61 = vmul.f32 0.0078125, %v510_v57 }
 0x20d   :  { %511 = vrcp.f32 %v344_v58  ;;  %v345_v62 = vadd.f32 1.0, %v343_v59  ;;  %v329_v63 = vmul.f32 %v326_v56, %v304_v61  ;;  %v330_v1 = vsel %vm327_vm5, %v328_v60, %v303_v55 }
 0x20f   :  { %513 = vrcp.f32 %v345_v62  ;;  %v331_v2 = vsel %vm327_vm5, %v329_v63, %v304_v61 }
 0x210   :  { %v418_v0 = vpack.c.bf16 %v331_v2, %v330_v1 }
 0x212   :  { %419 = vst [vmem:[#allocation7] sm:$0xff] %v418_v0  }
 0x213   :  { %570 = shalt.err (!%p567_p6)
}
 0x214   :  { %s571_s15 = scalar_lea.hbm %s760_s6, 128 }
 0x215   :  { %p572_p7 = scmp.ne.s32.totalorder %s760_s6, %s571_s15  ;;  %p575_p8 = scmp.lt.u32.totalorder %s571_s15, %s760_s6 }
 0x217   :  { %p577_p9 = pnand %p575_p8, %p572_p7 }
 0x219   :  { %580 = shalt.err (!%p577_p9)
}
 0x21a   :  { %367 = dma.vmem_to_hbm [thread:$0]  %s362_s9, 128, %s760_s6, [#allocation4], %s612_s11, %s612_s11, %s613_s12   ;;  %v512_v3 = vpop.eup %511 }
 0x21b   :  { %v348_v4 = vmul.f32 2.0, %v512_v3  ;;  %v514_v5 = vpop.eup %513  ;;  %s619_s22 = smov [#allocation8]  }
 0x21c   :  { %v349_v6 = vmul.f32 2.0, %v514_v5  ;;  %s373_s23 = sshll.u32 %s619_s22, 4  ;;  %s374_s23 = int_to_ptr.vmem [resolvable:$true] %s373_s23 }
 0x21d   :  { %v350_v7 = vsub.f32 1.0, %v348_v4  ;;  %s581_s24 = scalar_lea.vmem %s374_s23, 256  ;;  %p586_p11 = scmp.lt.s32.totalorder %s374_s23, %s374_s23 }
 0x21e   :  { %v351_v8 = vsub.f32 1.0, %v349_v6  ;;  %p582_p10 = scmp.ne.s32.totalorder %s374_s23, %s581_s24  ;;  %p587_p12 = scmp.lt.s32.totalorder %s581_s24, %s581_s24 }
 0x21f   :  { %v352_v9 = vmul.f32 3.1415927, %v350_v7 }
 0x220   :  { %v353_v10 = vmul.f32 3.1415927, %v351_v8  ;;  %p588_p13 = por %p587_p12, %p586_p11 }
 0x221   :  { %354 = vst [vmem:[#allocation8] sm:$0xff] %v352_v9 }
 0x222   :  { %355 = vst [vmem:[#allocation8 + $0x8] sm:$0xff] %v353_v10  ;;  %p589_p0 = pnand %p588_p13, %p582_p10 }
 0x224   :  { %592 = shalt.err (!%p589_p0)
}
 0x225   :  { %s593_s12 = scalar_lea.hbm %s761_s7, 256 }
 0x226   :  { %p594_p1 = scmp.ne.s32.totalorder %s761_s7, %s593_s12  ;;  %p597_p2 = scmp.lt.u32.totalorder %s593_s12, %s761_s7 }
 0x228   :  { %p599_p3 = pnand %p597_p2, %p594_p1 }
 0x22a   :  { %602 = shalt.err (!%p599_p3)
}
 0x22b   :  { %s620_s27 = smov 128   ;;  %s621_s28 = smov 8  }
 0x22c   :  { %379 = dma.vmem_to_hbm [thread:$0]  %s374_s23, 256, %s761_s7, [#allocation9], %s620_s27, %s620_s27, %s621_s28  }
 0x22d   :  { %607 = dma.done.wait [#allocation4], 128  }
 0x22e   :  { %608 = vsyncadd [#allocation4], 4294967168 }
 0x22f   :  { %609 = dma.done.wait [#allocation9], 256  }
 0x230   :  { %610 = vsyncadd [#allocation9], 4294967040 }
 0x231   :  { %386 = vsyncpa [#allocation3], 1 }
 0x232   :  { %387 = vsyncpa [#allocation6], 1 }
 0x233   :  { %388 = vsyncpa [#allocation4], 1 }
 0x234   :  { %389 = vsyncpa [#allocation9], 1 }

</bundles_post_ra>
